<compile_context>
chip_gen: v6e
topology: v6e:2x2x1
jax: 0.10.0
libtpu: 0.0.40
codegen_flags: <defaults>
</compile_context>

<pallas_src>
import functools

import jax
import jax.numpy as jnp
from jax.experimental import pallas as pl
from jax.experimental.pallas import tpu as pltpu

_MIB = 1024 * 1024


def _rmsnorm_kernel(x_ref, scale_ref, *rest, hidden, partial_size, eps, use_bias):
    # ref order: in_refs..., out_refs...
    if use_bias:
        offset_ref, o_ref = rest
    else:
        (o_ref,) = rest

    # Compute in f32 (reduction + normalize) to match the torch (f32) numerics.
    x = x_ref[...].astype(jnp.float32)

    if partial_size is None:
        sq_sum = jnp.sum(x * x, axis=-1, keepdims=True)
        d_x = hidden
    else:
        d_x = partial_size
        aligned = (partial_size // 128) * 128
        if aligned == partial_size:
            # Lane-aligned static slice: no iota/select at all.
            xs = x[:, :partial_size]
            sq_sum = jnp.sum(xs * xs, axis=-1, keepdims=True)
        else:
            # Sum the 128-aligned prefix with a static slice; mask only the
            # final <=128-lane chunk instead of the full (tile, hidden) block.
            rem = partial_size - aligned
            tail_width = min(128, hidden - aligned)
            xt = x[:, aligned:aligned + tail_width]
            lane = jax.lax.broadcasted_iota(jnp.int32, xt.shape, 1)
            sq_sum = jnp.sum(jnp.where(lane < rem, xt * xt, 0.0),
                             axis=-1, keepdims=True)
            if aligned > 0:
                xs = x[:, :aligned]
                sq_sum = sq_sum + jnp.sum(xs * xs, axis=-1, keepdims=True)

    # Match torch module exactly: norm_x = ||x_p||_2 ; rms = norm_x / sqrt(d);
    # x_normed = x / (rms + eps)   (eps added OUTSIDE the sqrt, as in the spec).
    norm_x = jnp.sqrt(sq_sum)
    rms_x = norm_x * (float(d_x) ** -0.5)
    # Per-row exact reciprocal (tile x 1) then a broadcast multiply — avoids a
    # full (tile x hidden) divide.
    inv = 1.0 / (rms_x + eps)
    x_normed = x * inv

    out = scale_ref[...].astype(jnp.float32) * x_normed
    if use_bias:
        out = out + offset_ref[...].astype(jnp.float32)
    o_ref[...] = out.astype(o_ref.dtype)


def _tpu_vmem_capacity_bytes():
    """Physical VMEM capacity; conservative (v7x-sized) fallback if unknown."""
    try:
        return int(pltpu.get_tpu_info().vmem_capacity_bytes)
    except Exception:
        return 64 * _MIB


def _pick_row_tile(rows, hidden, itemsize, vmem_capacity):
    """Row tile: as big as the VMEM footprint budget allows, aligned to the
    native sublane pack; only shrunk to keep grid >= 4 on two-TC (v7x) chips."""
    pack = max(8, 32 // itemsize)            # 8 f32, 16 bf16, 32 int8/fp8
    rows_rounded = -(-rows // pack) * pack

    # Per-element VMEM footprint of a (tile, hidden) block:
    #   2x input dtype (double-buffered x) + 2x output dtype (double-buffered
    #   out) + ~2x f32 for the in-kernel upcast / normalized intermediates.
    bytes_per_elem = 4 * itemsize + 2 * 4

    two_tc = vmem_capacity <= 64 * _MIB      # v7x-like: 64 MiB VMEM, 2 TensorCores
    if two_tc:
        footprint_budget = 36 * _MIB         # fits 48 MiB vmem_limit / 64 MiB physical
    else:
        footprint_budget = 72 * _MIB         # fits 96 MiB vmem_limit / 128 MiB physical

    tile = max(pack, footprint_budget // max(1, hidden * bytes_per_elem))
    tile = max(pack, (tile // pack) * pack)

    # Only two-TensorCore chips benefit from extra grid steps ("parallel" axis
    # is sharded across TCs); single-TC chips just pay per-step overhead.
    if two_tc and rows_rounded >= 4 * pack:
        per_step = -(-rows_rounded // 4)
        per_step = -(-per_step // pack) * pack
        tile = min(tile, per_step)

    return max(pack, min(tile, rows_rounded))


def rmsnorm_pallas(x, scale, offset=None, *, partial=-1.0, eps=1e-8,
                   row_tile=None):
    """Pallas RMSNorm. x: (..., hidden), scale/offset: (hidden,)."""
    hidden = x.shape[-1]
    orig_shape = x.shape
    x2d = x.reshape(-1, hidden)
    rows = x2d.shape[0]

    if 0.0 <= partial <= 1.0:
        # Same integer derivation as torch: int(normalized_shape * partial).
        partial_size = int(hidden * partial)
        if partial_size <= 0:
            raise ValueError(
                "partial RMSNorm with partial_size == 0 is undefined "
                "(torch would divide by zero); use partial < 0 to disable.")
    else:
        partial_size = None

    use_bias = offset is not None
    itemsize = jnp.dtype(x.dtype).itemsize

    vmem_capacity = _tpu_vmem_capacity_bytes()
    if row_tile is None:
        row_tile = _pick_row_tile(rows, hidden, itemsize, vmem_capacity)
    vmem_limit = (48 * _MIB) if vmem_capacity <= 64 * _MIB else (96 * _MIB)

    grid = (pl.cdiv(rows, row_tile),)   # ragged last block handled by Pallas

    # NOTE: output is only lane-dense when hidden % 128 == 0; smaller / odd
    # hidden sizes hit masked partial stores (acceptable for small test shapes).
    scale2d = scale.reshape(1, hidden)
    operands = [x2d, scale2d]
    in_specs = [
        pl.BlockSpec((row_tile, hidden), lambda i: (i, 0)),
        pl.BlockSpec((1, hidden), lambda i: (0, 0)),
    ]
    if use_bias:
        operands.append(offset.reshape(1, hidden))
        in_specs.append(pl.BlockSpec((1, hidden), lambda i: (0, 0)))

    kernel = functools.partial(
        _rmsnorm_kernel,
        hidden=hidden,
        partial_size=partial_size,
        eps=eps,
        use_bias=use_bias,
    )

    out = pl.pallas_call(
        kernel,
        out_shape=jax.ShapeDtypeStruct((rows, hidden), x.dtype),
        grid_spec=pltpu.PrefetchScalarGridSpec(
            num_scalar_prefetch=0,
            grid=grid,
            in_specs=in_specs,
            out_specs=pl.BlockSpec((row_tile, hidden), lambda i: (i, 0)),
        ),
        compiler_params=pltpu.CompilerParams(
            dimension_semantics=("parallel",),
            vmem_limit_bytes=vmem_limit,
        ),
    )(*operands)

    return out.reshape(orig_shape)


def rmsnorm_ref(x, scale, offset=None, *, partial=-1.0, eps=1e-8):
    """Pure-JAX reference mirroring the PyTorch forward."""
    hidden = x.shape[-1]
    if 0.0 <= partial <= 1.0:
        p = int(hidden * partial)
        norm_x = jnp.linalg.norm(x[..., :p], axis=-1, keepdims=True)
        d_x = p
    else:
        norm_x = jnp.linalg.norm(x, axis=-1, keepdims=True)
        d_x = hidden
    rms_x = norm_x * (d_x ** -0.5)
    x_normed = x / (rms_x + eps)
    out = scale * x_normed
    if offset is not None:
        out = out + offset
    return out


if __name__ == "__main__":
    key = jax.random.PRNGKey(0)
    k_x, k_x2, k_x3, k_off = jax.random.split(key, 4)

    batch, seq, hidden = 2, 8, 32
    x = jax.random.normal(k_x, (batch, seq, hidden), dtype=jnp.float32)

    # Parameters matching nn.Parameter init (scale=ones, offset=zeros when bias).
    scale = jnp.ones((hidden,), dtype=jnp.float32)

    # 1) Full RMSNorm (partial disabled, module default, bias=False).
    y = jax.block_until_ready(rmsnorm_pallas(x, scale, partial=-1.0, eps=1e-8))
    y_ref = rmsnorm_ref(x, scale, partial=-1.0, eps=1e-8)
    assert jnp.allclose(y, y_ref, atol=1e-5, rtol=1e-5), "full RMSNorm mismatch"

    # 2) Partial RMSNorm (partial=0.5, non-lane-aligned tail-mask path).
    y_p = jax.block_until_ready(rmsnorm_pallas(x, scale, partial=0.5, eps=1e-8))
    y_p_ref = rmsnorm_ref(x, scale, partial=0.5, eps=1e-8)
    assert jnp.allclose(y_p, y_p_ref, atol=1e-5, rtol=1e-5), "partial RMSNorm mismatch"

    # 3) Bias path (nonzero deterministic offset to actually exercise the add).
    offset = 0.1 * jax.random.normal(k_off, (hidden,), dtype=jnp.float32)
    y_b = jax.block_until_ready(rmsnorm_pallas(x, scale, offset, partial=-1.0, eps=1e-8))
    y_b_ref = rmsnorm_ref(x, scale, offset, partial=-1.0, eps=1e-8)
    assert jnp.allclose(y_b, y_b_ref, atol=1e-5, rtol=1e-5), "biased RMSNorm mismatch"

    # 4) Ragged row count with a forced multi-block grid whose last block is
    #    mostly padding (regression test for the write-masked OOB rows).
    x_r = jax.random.normal(k_x2, (2, 5, hidden), dtype=jnp.float32)  # 10 rows
    y_r = jax.block_until_ready(
        rmsnorm_pallas(x_r, scale, partial=-1.0, eps=1e-8, row_tile=8))
    y_r_ref = rmsnorm_ref(x_r, scale, partial=-1.0, eps=1e-8)
    assert jnp.allclose(y_r, y_r_ref, atol=1e-5, rtol=1e-5), "ragged-rows RMSNorm mismatch"
    assert not bool(jnp.any(jnp.isnan(y_r))), "NaN leaked from padded rows"

    # 5) Lane-dense hidden (256): exercises both the 128-aligned static-slice
    #    partial path (partial=0.5 -> 128) and the prefix+tail path
    #    (partial=0.625 -> 160 = 128 aligned + 32 masked).
    hidden2 = 256
    x2 = jax.random.normal(k_x3, (2, 4, hidden2), dtype=jnp.float32)
    scale2 = jnp.ones((hidden2,), dtype=jnp.float32)
    for p in (0.5, 0.625):
        y2 = jax.block_until_ready(rmsnorm_pallas(x2, scale2, partial=p, eps=1e-8))
        y2_ref = rmsnorm_ref(x2, scale2, partial=p, eps=1e-8)
        assert jnp.allclose(y2, y2_ref, atol=1e-5, rtol=1e-5), \
            f"partial={p} hidden=256 RMSNorm mismatch"

    print("KERNEL_OK")
</pallas_src>

<mosaic_0001>
module attributes {stable_mosaic.version = 11 : i64} {
  func.func @_rmsnorm_kernel(%arg0: i32, %arg1: memref<16x32xf32, #tpu.memory_space<vmem>>, %arg2: memref<1x32xf32, #tpu.memory_space<vmem>>, %arg3: memref<16x32xf32, #tpu.memory_space<vmem>>) attributes {dimension_semantics = [#tpu.dimension_semantics<parallel>], iteration_bounds = array<i64: 1>, scalar_prefetch = 0 : i64, scratch_operands = 0 : i64, tpu.core_type = #tpu.core_type<tc>, window_params = [{transform_indices = @transform_0, window_bounds = array<i64: 16, 32>}, {pipeline_mode = #tpu.pipeline_mode<synchronous>, transform_indices = @transform_1, window_bounds = array<i64: 1, 32>}, {transform_indices = @transform_2, window_bounds = array<i64: 16, 32>}]} {
    %c0 = arith.constant 0 : index
    %c0_0 = arith.constant 0 : index
    %0 = vector.load %arg1[%c0, %c0_0] : memref<16x32xf32, #tpu.memory_space<vmem>>, vector<16x32xf32>
    %1 = arith.mulf %0, %0 : vector<16x32xf32>
    %cst = arith.constant dense<0.000000e+00> : vector<16xf32>
    %2 = vector.multi_reduction <add>, %1, %cst [1] : vector<16x32xf32> to vector<16xf32>
    %3 = vector.shape_cast %2 : vector<16xf32> to vector<16x1xf32>
    %4 = math.sqrt %3 : vector<16x1xf32>
    %cst_1 = arith.constant 0.176776692 : f32
    %5 = vector.broadcast %cst_1 : f32 to vector<16x1xf32>
    %6 = arith.mulf %4, %5 : vector<16x1xf32>
    %cst_2 = arith.constant 9.99999993E-9 : f32
    %7 = vector.broadcast %cst_2 : f32 to vector<16x1xf32>
    %8 = arith.addf %6, %7 : vector<16x1xf32>
    %cst_3 = arith.constant 1.000000e+00 : f32
    %9 = vector.broadcast %cst_3 : f32 to vector<16x1xf32>
    %10 = arith.divf %9, %8 : vector<16x1xf32>
    %11 = vector.broadcast %10 : vector<16x1xf32> to vector<16x32xf32>
    %12 = arith.mulf %0, %11 : vector<16x32xf32>
    %c0_4 = arith.constant 0 : index
    %c0_5 = arith.constant 0 : index
    %13 = vector.load %arg2[%c0_4, %c0_5] : memref<1x32xf32, #tpu.memory_space<vmem>>, vector<1x32xf32>
    %14 = vector.broadcast %13 : vector<1x32xf32> to vector<16x32xf32>
    %15 = arith.mulf %14, %12 : vector<16x32xf32>
    %c0_6 = arith.constant 0 : index
    %c0_7 = arith.constant 0 : index
    %16 = vector.load %arg3[%c0_6, %c0_7] : memref<16x32xf32, #tpu.memory_space<vmem>>, vector<16x32xf32>
    tpu.vector_store %arg3[%c0_6, %c0_7], %15 {strides = array<i32>} : memref<16x32xf32, #tpu.memory_space<vmem>>, vector<16x32xf32>,
    return
  }
  func.func @transform_0(%arg0: i32) -> (i32, i32) {
    %c0_i32 = arith.constant 0 : i32
    %c0_i32_0 = arith.constant 0 : i32
    return %arg0, %c0_i32 : i32, i32
  }
  func.func @transform_1(%arg0: i32) -> (i32, i32) {
    %c0_i32 = arith.constant 0 : i32
    %c0_i32_0 = arith.constant 0 : i32
    %c0_i32_1 = arith.constant 0 : i32
    return %c0_i32, %c0_i32_0 : i32, i32
  }
  func.func @transform_2(%arg0: i32) -> (i32, i32) {
    %c0_i32 = arith.constant 0 : i32
    %c0_i32_0 = arith.constant 0 : i32
    return %arg0, %c0_i32 : i32, i32
  }
}

</mosaic_0001>

<bundles_post_ra>
// kernel: tpu_custom_call.1
= control target key start
LH: loop header
LB: loop body
LE: loop exit
PB: predicated region body
PF: predicated region fallthrough
CT: control target
= control target key end

     0   :  { %7 = vsyncpa [#allocation3], 0  ;;  %s184_s0 = inlined_call_operand.hbm [shape: f32[16,32], index: 0, kind: input, shape index: {}]   ;;  %s185_s1 = inlined_call_operand.vmem [shape: f32[1,32], index: 1, kind: input, shape index: {}]   ;;  %s186_s2 = inlined_call_operand.hbm [shape: f32[16,32], index: 2, kind: output, shape index: {}]  }
   0x1   :  { %8 = vsyncpa [#allocation4], 0  ;;  %s146_s9 = smov [#allocation2]  }
   0x2   :  { %s14_s10 = sshll.u32 %s146_s9, 4  ;;  %s15_s10 = int_to_ptr.vmem [resolvable:$true] %s14_s10 }
   0x3   :  { %s110_s11 = scalar_lea.vmem %s15_s10, 256  ;;  %p115_p1 = scmp.lt.s32.totalorder %s15_s10, %s15_s10 }
   0x4   :  { %p111_p0 = scmp.ne.s32.totalorder %s15_s10, %s110_s11  ;;  %p116_p2 = scmp.lt.s32.totalorder %s110_s11, %s110_s11 }
   0x6   :  { %p117_p3 = por %p116_p2, %p115_p1 }
   0x8   :  { %p118_p4 = pnand %p117_p3, %p111_p0 }
   0xa   :  { %121 = shalt.err (!%p118_p4)
}
   0xb   :  { %s147_s12 = smov 128   ;;  %s148_s13 = smov 8  }
   0xc   :  { %20 = dma.hbm_to_vmem [thread:$0]  %s184_s0, 256, %s15_s10, [#allocation3], %s147_s12, %s147_s12, %s148_s13  }
   0xd   :  { %142 = dma.done.wait [#allocation3], 256  }
   0xe   :  { %143 = vsyncadd [#allocation3], 4294967040  ;;  %v26_v0 = vld [vmem:[#allocation2] sm:$0xff]  ;;  %vm30_vm0 = vcmask 261120   ;;  %v27_v1 = vld [vmem:[#allocation2 + $0x8] sm:$0xff]  ;;  %s149_s17 = smov [#allocation5]  }
   0xf   :  { %v28_v2 = vmul.f32 %v26_v0, %v26_v0  ;;  %v29_v3 = vmul.f32 %v27_v1, %v27_v1  ;;  %v89_v23 = vld [vmem:[%s185_s1] ss:$0 sm:$0xff]  ;;  %s77_s18 = sshll.u32 %s149_s17, 4  ;;  %s78_s18 = int_to_ptr.vmem [resolvable:$true] %s77_s18 }
  0x10   :  { %s122_s19 = scalar_lea.vmem %s78_s18, 256  ;;  %p127_p6 = scmp.lt.s32.totalorder %s78_s18, %s78_s18 }
  0x11   :  { %v31_v4 = vsel %vm30_vm0, %v28_v2, 0.0  ;;  %v34_v5 = vsel %vm30_vm0, %v29_v3, 0.0  ;;  %p123_p5 = scmp.ne.s32.totalorder %s78_s18, %s122_s19  ;;  %p128_p7 = scmp.lt.s32.totalorder %s122_s19, %s122_s19 }
  0x12   :  { %32 = vadd.xlane.f32.xlu0 %v31_v4 }
  0x13   :  { %p129_p8 = por %p128_p7, %p127_p6 }
  0x15   :  { %p130_p9 = pnand %p129_p8, %p123_p5 }
  0x16   :  { %35 = vadd.xlane.f32.xlu0 %v34_v5 }
  0x9b   :  { %v33_v6 = vpop.xlane.xlu0 %32 }
  0x9c   :  { %94 = vrsqrt.f32 %v33_v6  ;;  %vm39_vm1 = vcmp.eq.f32.partialorder %v33_v6, inf  ;;  %v42_v10 = vand.u32 2147483648, %v33_v6  ;;  %vm41_vm2 = vcmp.eq.f32.partialorder %v33_v6, 0.0 }
  0x9f   :  { %v36_v7 = vpop.xlane.xlu0 %35 }
  0xa0   :  { %96 = vrsqrt.f32 %v36_v7  ;;  %vm46_vm3 = vcmp.eq.f32.partialorder %v36_v7, inf  ;;  %v49_v16 = vand.u32 2147483648, %v36_v7  ;;  %vm48_vm4 = vcmp.eq.f32.partialorder %v36_v7, 0.0 }
  0xa9   :  { %v95_v8 = vpop.eup %94 }
  0xaa   :  { %v38_v9 = vmul.f32 %v95_v8, %v33_v6 }
  0xac   :  { %v40_v11 = vsel %vm39_vm1, %v33_v6, %v38_v9 }
  0xad   :  { %v97_v12 = vpop.eup %96  ;;  %v43_v13 = vsel %vm41_vm2, %v42_v10, %v40_v11 }
  0xae   :  { %v51_v14 = vmul.f32 0.17677669, %v43_v13  ;;  %v45_v15 = vmul.f32 %v97_v12, %v36_v7 }
  0xb0   :  { %v53_v17 = vadd.f32 1e-08, %v51_v14  ;;  %v47_v18 = vsel %vm46_vm3, %v36_v7, %v45_v15 }
  0xb1   :  { %v50_v19 = vsel %vm48_vm4, %v49_v16, %v47_v18 }
  0xb2   :  { %98 = vrcp.f32 %v53_v17  ;;  %v52_v20 = vmul.f32 0.17677669, %v50_v19 }
  0xb4   :  { %v54_v21 = vadd.f32 1e-08, %v52_v20 }
  0xb6   :  { %100 = vrcp.f32 %v54_v21 }
  0xbf   :  { %v99_v22 = vpop.eup %98 }
  0xc0   :  { %v59_v24 = vmul.f32 %v99_v22, %v26_v0 }
  0xc2   :  { %v68_v25 = vmul.f32 %v89_v23, %v59_v24 }
  0xc3   :  { %v101_v26 = vpop.eup %100 }
  0xc4   :  { %v60_v27 = vmul.f32 %v101_v26, %v27_v1  ;;  %70 = vst.msk [vmem:[#allocation5] sm:$0xff] %vm30_vm0, %v68_v25 }
  0xc6   :  { %v69_v28 = vmul.f32 %v89_v23, %v60_v27 }
  0xc8   :  { %71 = vst.msk [vmem:[#allocation5 + $0x8] sm:$0xff] %vm30_vm0, %v69_v28 }
  0xc9   :  { %133 = shalt.err (!%p130_p9)
}
  0xca   :  { %83 = dma.vmem_to_hbm [thread:$0]  %s78_s18, 256, %s186_s2, [#allocation4], %s147_s12, %s147_s12, %s148_s13  }
  0xcb   :  { %144 = dma.done.wait [#allocation4], 256  }
  0xcc   :  { %145 = vsyncadd [#allocation4], 4294967040 }
  0xcd   :  { %87 = vsyncpa [#allocation3], 1 }
  0xce   :  { %88 = vsyncpa [#allocation4], 1 }

</bundles_post_ra>
